<compile_context>
chip_gen: v7x
topology: tpu7x:2x2x1
jax: 0.10.0
libtpu: 0.0.40
codegen_flags: <defaults>
</compile_context>

<pallas_src>
import jax
import jax.numpy as jnp
import numpy as np
from jax.experimental import pallas as pl
from jax.experimental.pallas import tpu as pltpu


def qnet_kernel(x_ref, w1_ref, b1_ref, w2_ref, b2_ref, w3_ref, b3_ref, o_ref):
    """Whole 3-layer MLP on one batch tile. Weights live fully in VMEM.

    x_ref  : (tile_b, Din)  compute dtype (f32 or bf16)
    w1_ref : (Din, Dh)      compute dtype      b1_ref: (1, Dh) f32
    w2_ref : (Dh, Dh)       compute dtype      b2_ref: (1, Dh) f32
    w3_ref : (1, Dh)        f32 (single output column, stored as a row)
    b3_ref : (1, 1)         f32
    o_ref  : (1, 1, tile_b) f32 (lane-dense output block)
    """
    cdt = w1_ref.dtype  # MXU operand dtype; accumulation is always f32.

    h1 = jnp.dot(x_ref[...], w1_ref[...], preferred_element_type=jnp.float32) + b1_ref[...]
    h1 = jnp.maximum(h1, 0.0)

    h2 = jnp.dot(h1.astype(cdt), w2_ref[...], preferred_element_type=jnp.float32) + b2_ref[...]
    h2 = jnp.maximum(h2, 0.0)

    # Layer 3 (out_features == 1): (1, Dh) x (tile_b, Dh)^T -> (1, tile_b).
    # This is the per-row multiply + lane reduction, fused into one contraction,
    # and the result already has the lane-dense (1, tile_b) orientation.
    o = jax.lax.dot_general(
        w3_ref[...], h2,
        dimension_numbers=(((1,), (1,)), ((), ())),
        preferred_element_type=jnp.float32,
    )
    o_ref[...] = (o + b3_ref[...]).reshape(o_ref.shape).astype(o_ref.dtype)


def _round_up(n, m):
    return ((n + m - 1) // m) * m


def _choose_tile_b(B):
    # Small batches: a single block; such calls are launch/DMA-latency bound and
    # tiling only adds per-step overhead.
    if B <= 512:
        return B
    # Large tiles amortize the ~0.35 us/step overhead; prefer an even number of
    # steps (>= 2) so both v7x TensorCores get equal work; keep tiles >= 256
    # rows so the MXU M-dim stays filled on v6e/v7x.
    for t in (2048, 1024, 512, 256):
        if B % t == 0 and (B // t) % 2 == 0:
            return t
    for t in (2048, 1024, 512, 256):
        if B % t == 0 and B // t >= 2:
            return t
    # No clean divisor: tile at 256 and zero-pad the batch (sliced off below).
    return 256


def _vmem_limit_bytes(working_set_bytes):
    try:
        cap = int(pltpu.get_tpu_info().vmem_capacity_bytes)
    except Exception:
        cap = 64 << 20  # conservative fallback (v7x-sized)
    # 2x headroom over the estimated working set, >= 16 MiB, capped at 3/4 of
    # physical VMEM (~48 MiB on v7x, ~96 MiB on v5e/v6e) to leave room for
    # Mosaic-internal scratch.
    return int(min(max(2 * working_set_bytes, 16 << 20), cap * 3 // 4))


def qnetwork_forward(x, params, *, compute_dtype=jnp.bfloat16, tile_b=None):
    """x: (B, input_dim). params: dict of w1,b1,w2,b2,w3,b3 (see layout). Returns (B, 1) f32."""
    B, Din = x.shape
    Dh = params["w1"].shape[1]
    Dout = params["w3"].shape[1]
    assert Dout == 1, "QNetwork has output_dim == 1"

    cdt = jnp.dtype(compute_dtype)

    # Stream x in the MXU operand dtype (bf16 halves the dominant HBM read).
    x_in = x.astype(cdt)
    w1 = params["w1"].astype(cdt)
    w2 = params["w2"].astype(cdt)
    b1 = params["b1"].astype(jnp.float32)
    b2 = params["b2"].astype(jnp.float32)
    # Final layer kept f32 (it runs off the critical MXU path and is tiny).
    w3r = params["w3"].astype(jnp.float32).reshape(1, Dh)  # column -> row
    b3 = params["b3"].astype(jnp.float32).reshape(1, 1)

    if tile_b is None:
        tile_b = _choose_tile_b(B)
    else:
        tile_b = int(tile_b)
        if tile_b < B:
            tile_b = _round_up(max(tile_b, 8), 8)  # sublane (8) constraint when blocked
        else:
            tile_b = B

    nb = -(-B // tile_b)  # ceil
    Bp = nb * tile_b
    if Bp != B:
        # Zero-pad the batch so every grid step sees a full, aligned tile.
        x_in = jnp.pad(x_in, ((0, Bp - B), (0, 0)))

    # Weights / biases: whole-array VMEM residents, no pipelining (loaded once).
    full_vmem = pl.BlockSpec(memory_space=pltpu.MemorySpace.VMEM)

    w_bytes = (w1.size + w2.size) * cdt.itemsize + (b1.size + b2.size + w3r.size + b3.size) * 4
    x_tile_bytes = tile_b * Din * cdt.itemsize
    out_tile_bytes = tile_b * 4
    act_bytes = 3 * tile_b * Dh * 4  # h1, h2 + temporaries
    vmem_limit = _vmem_limit_bytes(
        w_bytes + 2 * x_tile_bytes + 2 * out_tile_bytes + act_bytes
    )

    flops = 2 * Bp * (Din * Dh + Dh * Dh + Dh)
    bytes_accessed = Bp * Din * cdt.itemsize + w_bytes + Bp * 4

    out_p = pl.pallas_call(
        qnet_kernel,
        out_shape=jax.ShapeDtypeStruct((nb, 1, tile_b), jnp.float32),
        grid=(nb,),
        in_specs=[
            pl.BlockSpec((tile_b, Din), lambda i: (i, 0)),  # x: pipelined over batch tiles
            full_vmem,  # w1
            full_vmem,  # b1
            full_vmem,  # w2
            full_vmem,  # b2
            full_vmem,  # w3 (1, Dh)
            full_vmem,  # b3 (1, 1)
        ],
        out_specs=pl.BlockSpec((1, 1, tile_b), lambda i: (i, 0, 0)),  # lane-dense row per step
        compiler_params=pltpu.CompilerParams(
            dimension_semantics=("parallel",),
            vmem_limit_bytes=vmem_limit,
        ),
        cost_estimate=pl.CostEstimate(
            flops=flops, transcendentals=0, bytes_accessed=bytes_accessed
        ),
    )(x_in, w1, b1, w2, b2, w3r, b3)

    return out_p.reshape(-1)[:B].reshape(B, 1)


def init_params(key, input_dim, hidden_dim, output_dim):
    """Deterministic synthetic init (PyTorch-style uniform bounds), weights as (in, out)."""
    ks = jax.random.split(key, 6)

    def linear(kw, kb, fan_in, fan_out):
        bound = 1.0 / np.sqrt(fan_in)
        w = jax.random.uniform(kw, (fan_in, fan_out), jnp.float32, -bound, bound)
        b = jax.random.uniform(kb, (1, fan_out), jnp.float32, -bound, bound)
        return w, b

    w1, b1 = linear(ks[0], ks[1], input_dim, hidden_dim)
    w2, b2 = linear(ks[2], ks[3], hidden_dim, hidden_dim)
    w3, b3 = linear(ks[4], ks[5], hidden_dim, output_dim)
    return dict(w1=w1, b1=b1, w2=w2, b2=b2, w3=w3, b3=b3)


def reference_forward(x, p, compute_dtype=jnp.bfloat16):
    """Pure-JAX reference with the same operand-dtype policy as the kernel."""
    cdt = jnp.dtype(compute_dtype)
    h1 = jnp.maximum(
        jnp.dot(x.astype(cdt), p["w1"].astype(cdt), preferred_element_type=jnp.float32)
        + p["b1"], 0.0)
    h2 = jnp.maximum(
        jnp.dot(h1.astype(cdt), p["w2"].astype(cdt), preferred_element_type=jnp.float32)
        + p["b2"], 0.0)
    # Layer 3 is always f32, matching the kernel.
    return jnp.dot(h2, p["w3"].astype(jnp.float32), preferred_element_type=jnp.float32) + p["b3"]


if __name__ == "__main__":
    # Small shapes consistent with the module (input_dim, hidden_dim, output_dim=1).
    INPUT_DIM, HIDDEN_DIM, OUTPUT_DIM = 256, 128, 1

    key = jax.random.PRNGKey(0)
    k_x, k_p, k_x2 = jax.random.split(key, 3)
    params = init_params(k_p, INPUT_DIM, HIDDEN_DIM, OUTPUT_DIM)

    # 1) Small batch (single block), f32 path: exact match against the f32 reference.
    x = jax.random.normal(k_x, (16, INPUT_DIM), dtype=jnp.float32)
    out = jax.block_until_ready(qnetwork_forward(x, params, compute_dtype=jnp.float32))
    ref = jax.block_until_ready(reference_forward(x, params, jnp.float32))
    assert out.shape == (16, OUTPUT_DIM)
    np.testing.assert_allclose(np.asarray(out), np.asarray(ref), rtol=1e-5, atol=1e-5)

    # 2) Larger, non-divisible batch (tiled + zero-padded grid path), f32.
    x2 = jax.random.normal(k_x2, (600, INPUT_DIM), dtype=jnp.float32)
    out2 = jax.block_until_ready(qnetwork_forward(x2, params, compute_dtype=jnp.float32))
    ref2 = jax.block_until_ready(reference_forward(x2, params, jnp.float32))
    assert out2.shape == (600, OUTPUT_DIM)
    np.testing.assert_allclose(np.asarray(out2), np.asarray(ref2), rtol=1e-5, atol=1e-5)

    # 3) Default bf16 MXU-operand path on the tiled batch vs a matching bf16 reference.
    out3 = jax.block_until_ready(qnetwork_forward(x2, params))
    ref3 = jax.block_until_ready(reference_forward(x2, params, jnp.bfloat16))
    np.testing.assert_allclose(np.asarray(out3), np.asarray(ref3), rtol=2e-2, atol=2e-2)

    print("KERNEL_OK")
</pallas_src>

<mosaic_0001>
module attributes {stable_mosaic.version = 11 : i64} {
  func.func @qnet_kernel(%arg0: i32, %arg1: memref<16x256xf32, #tpu.memory_space<vmem>>, %arg2: memref<256x128xf32, #tpu.memory_space<vmem>>, %arg3: memref<1x128xf32, #tpu.memory_space<vmem>>, %arg4: memref<128x128xf32, #tpu.memory_space<vmem>>, %arg5: memref<1x128xf32, #tpu.memory_space<vmem>>, %arg6: memref<1x128xf32, #tpu.memory_space<vmem>>, %arg7: memref<1x1xf32, #tpu.memory_space<vmem>>, %arg8: memref<1x1x16xf32, #tpu.memory_space<vmem>>) attributes {dimension_semantics = [#tpu.dimension_semantics<parallel>], iteration_bounds = array<i64: 1>, scalar_prefetch = 0 : i64, scratch_operands = 0 : i64, tpu.core_type = #tpu.core_type<tc>, window_params = [{transform_indices = @transform_0, window_bounds = array<i64: 16, 256>}, {pipeline_mode = #tpu.pipeline_mode<synchronous>, transform_indices = @transform_1, window_bounds = array<i64: 256, 128>}, {pipeline_mode = #tpu.pipeline_mode<synchronous>, transform_indices = @transform_2, window_bounds = array<i64: 1, 128>}, {pipeline_mode = #tpu.pipeline_mode<synchronous>, transform_indices = @transform_3, window_bounds = array<i64: 128, 128>}, {pipeline_mode = #tpu.pipeline_mode<synchronous>, transform_indices = @transform_4, window_bounds = array<i64: 1, 128>}, {pipeline_mode = #tpu.pipeline_mode<synchronous>, transform_indices = @transform_5, window_bounds = array<i64: 1, 128>}, {pipeline_mode = #tpu.pipeline_mode<synchronous>, transform_indices = @transform_6, window_bounds = array<i64: 1, 1>}, {transform_indices = @transform_7, window_bounds = array<i64: 1, 1, 16>}]} {
    %c0 = arith.constant 0 : index
    %c0_0 = arith.constant 0 : index
    %0 = vector.load %arg1[%c0, %c0_0] : memref<16x256xf32, #tpu.memory_space<vmem>>, vector<16x256xf32>
    %c0_1 = arith.constant 0 : index
    %c0_2 = arith.constant 0 : index
    %1 = vector.load %arg2[%c0_1, %c0_2] : memref<256x128xf32, #tpu.memory_space<vmem>>, vector<256x128xf32>
    %cst = arith.constant dense<0.000000e+00> : vector<16x128xf32>
    %2 = tpu.matmul %0, %1, %cst {dimension_numbers = #tpu.dot_dimension_numbers<[1], [0], [0], [1], [0, 0, 1, 1], [], []>} : vector<16x256xf32>, vector<256x128xf32>, vector<16x128xf32> -> vector<16x128xf32>
    %c0_3 = arith.constant 0 : index
    %c0_4 = arith.constant 0 : index
    %3 = vector.load %arg3[%c0_3, %c0_4] : memref<1x128xf32, #tpu.memory_space<vmem>>, vector<1x128xf32>
    %4 = vector.broadcast %3 : vector<1x128xf32> to vector<16x128xf32>
    %5 = arith.addf %2, %4 : vector<16x128xf32>
    %cst_5 = arith.constant 0.000000e+00 : f32
    %6 = vector.broadcast %cst_5 : f32 to vector<16x128xf32>
    %7 = arith.maximumf %5, %6 : vector<16x128xf32>
    %c0_6 = arith.constant 0 : index
    %c0_7 = arith.constant 0 : index
    %8 = vector.load %arg4[%c0_6, %c0_7] : memref<128x128xf32, #tpu.memory_space<vmem>>, vector<128x128xf32>
    %cst_8 = arith.constant dense<0.000000e+00> : vector<16x128xf32>
    %9 = tpu.matmul %7, %8, %cst_8 {dimension_numbers = #tpu.dot_dimension_numbers<[1], [0], [0], [1], [0, 0, 1, 1], [], []>} : vector<16x128xf32>, vector<128x128xf32>, vector<16x128xf32> -> vector<16x128xf32>
    %c0_9 = arith.constant 0 : index
    %c0_10 = arith.constant 0 : index
    %10 = vector.load %arg5[%c0_9, %c0_10] : memref<1x128xf32, #tpu.memory_space<vmem>>, vector<1x128xf32>
    %11 = vector.broadcast %10 : vector<1x128xf32> to vector<16x128xf32>
    %12 = arith.addf %9, %11 : vector<16x128xf32>
    %cst_11 = arith.constant 0.000000e+00 : f32
    %13 = vector.broadcast %cst_11 : f32 to vector<16x128xf32>
    %14 = arith.maximumf %12, %13 : vector<16x128xf32>
    %c0_12 = arith.constant 0 : index
    %c0_13 = arith.constant 0 : index
    %15 = vector.load %arg6[%c0_12, %c0_13] : memref<1x128xf32, #tpu.memory_space<vmem>>, vector<1x128xf32>
    %cst_14 = arith.constant dense<0.000000e+00> : vector<1x16xf32>
    %16 = tpu.matmul %15, %14, %cst_14 {dimension_numbers = #tpu.dot_dimension_numbers<[1], [1], [0], [0], [0, 0, 1, 0], [], []>} : vector<1x128xf32>, vector<16x128xf32>, vector<1x16xf32> -> vector<1x16xf32>
    %c0_15 = arith.constant 0 : index
    %c0_16 = arith.constant 0 : index
    %17 = vector.load %arg7[%c0_15, %c0_16] : memref<1x1xf32, #tpu.memory_space<vmem>>, vector<1x1xf32>
    %18 = vector.broadcast %17 : vector<1x1xf32> to vector<1x16xf32>
    %19 = arith.addf %16, %18 : vector<1x16xf32>
    %20 = vector.shape_cast %19 : vector<1x16xf32> to vector<1x1x16xf32>
    %c0_17 = arith.constant 0 : index
    %c0_18 = arith.constant 0 : index
    %c0_19 = arith.constant 0 : index
    %21 = vector.load %arg8[%c0_17, %c0_18, %c0_19] : memref<1x1x16xf32, #tpu.memory_space<vmem>>, vector<1x1x16xf32>
    tpu.vector_store %arg8[%c0_17, %c0_18, %c0_19], %20 {strides = array<i32>} : memref<1x1x16xf32, #tpu.memory_space<vmem>>, vector<1x1x16xf32>,
    return
  }
  func.func @transform_0(%arg0: i32) -> (i32, i32) {
    %c0_i32 = arith.constant 0 : i32
    %c0_i32_0 = arith.constant 0 : i32
    return %arg0, %c0_i32 : i32, i32
  }
  func.func @transform_1(%arg0: i32) -> (i32, i32) {
    %c0_i32 = arith.constant 0 : i32
    %c0_i32_0 = arith.constant 0 : i32
    %c0_i32_1 = arith.constant 0 : i32
    return %c0_i32, %c0_i32_0 : i32, i32
  }
  func.func @transform_2(%arg0: i32) -> (i32, i32) {
    %c0_i32 = arith.constant 0 : i32
    %c0_i32_0 = arith.constant 0 : i32
    %c0_i32_1 = arith.constant 0 : i32
    return %c0_i32, %c0_i32_0 : i32, i32
  }
  func.func @transform_3(%arg0: i32) -> (i32, i32) {
    %c0_i32 = arith.constant 0 : i32
    %c0_i32_0 = arith.constant 0 : i32
    %c0_i32_1 = arith.constant 0 : i32
    return %c0_i32, %c0_i32_0 : i32, i32
  }
  func.func @transform_4(%arg0: i32) -> (i32, i32) {
    %c0_i32 = arith.constant 0 : i32
    %c0_i32_0 = arith.constant 0 : i32
    %c0_i32_1 = arith.constant 0 : i32
    return %c0_i32, %c0_i32_0 : i32, i32
  }
  func.func @transform_5(%arg0: i32) -> (i32, i32) {
    %c0_i32 = arith.constant 0 : i32
    %c0_i32_0 = arith.constant 0 : i32
    %c0_i32_1 = arith.constant 0 : i32
    return %c0_i32, %c0_i32_0 : i32, i32
  }
  func.func @transform_6(%arg0: i32) -> (i32, i32) {
    %c0_i32 = arith.constant 0 : i32
    %c0_i32_0 = arith.constant 0 : i32
    %c0_i32_1 = arith.constant 0 : i32
    return %c0_i32, %c0_i32_0 : i32, i32
  }
  func.func @transform_7(%arg0: i32) -> (i32, i32, i32) {
    %c0_i32 = arith.constant 0 : i32
    %c0_i32_0 = arith.constant 0 : i32
    %c0_i32_1 = arith.constant 0 : i32
    return %arg0, %c0_i32, %c0_i32_0 : i32, i32, i32
  }
}

</mosaic_0001>

<bundles_post_ra>
// kernel: tpu_custom_call.1
= control target key start
LH: loop header
LB: loop body
LE: loop exit
PB: predicated region body
PF: predicated region fallthrough
CT: control target
= control target key end

     0   :  { %s784_s0 = inlined_call_operand.hbm [shape: f32[16,256], index: 0, kind: input, shape index: {}]   ;;  %s785_s1 = inlined_call_operand.hbm [shape: f32[256,128], index: 1, kind: input, shape index: {}]   ;;  %s786_s2 = inlined_call_operand.vmem [shape: f32[1,128], index: 2, kind: input, shape index: {}]   ;;  %s787_s3 = inlined_call_operand.hbm [shape: f32[128,128], index: 3, kind: input, shape index: {}]   ;;  %s788_s4 = inlined_call_operand.vmem [shape: f32[1,128], index: 4, kind: input, shape index: {}]   ;;  %s789_s5 = inlined_call_operand.vmem [shape: f32[1,128], index: 5, kind: input, shape index: {}]   ;;  %s790_s6 = inlined_call_operand.<no memory space> [shape: f32[1,1], index: 6, kind: input, shape index: {}]   ;;  %s791_s7 = inlined_call_operand.hbm [shape: f32[1,1,16], index: 7, kind: output, shape index: {}]  }
   0x1   :  { %v12_v0 = vstv %s790_s6 }
   0x2   :  { %13 = vst [vmem:[#allocation2] sm:$0x1] %v12_v0 }
   0x3   :  { %14 = vsyncpa [#allocation4], 0 }
   0x4   :  { %15 = vsyncpa [#allocation7], 0 }
   0x5   :  { %16 = vsyncpa [#allocation5], 0  ;;  %s666_s26 = smov [#allocation6]   ;;  %s572_s30 = scalar_lea.hbm %s785_s1, 4096 }
   0x6   :  { %s34_s27 = sshll.u32 %s666_s26, 4  ;;  %p573_p0 = scmp.ne.s32.totalorder %s785_s1, %s572_s30  ;;  %s35_s27 = int_to_ptr.vmem [resolvable:$true] %s34_s27 }
   0x7   :  { %p576_p1 = scmp.lt.u32.totalorder %s572_s30, %s785_s1 }
   0x9   :  { %p578_p2 = pnand %p576_p1, %p573_p0 }
   0xb   :  { %581 = shalt.err (!%p578_p2)
}
   0xc   :  { %s582_s6 = scalar_lea.vmem %s35_s27, 4096  ;;  %p587_p4 = scmp.lt.s32.totalorder %s35_s27, %s35_s27 }
   0xd   :  { %p583_p3 = scmp.ne.s32.totalorder %s35_s27, %s582_s6  ;;  %p588_p5 = scmp.lt.s32.totalorder %s582_s6, %s582_s6 }
   0xf   :  { %p589_p6 = por %p588_p5, %p587_p4 }
  0x11   :  { %p590_p7 = pnand %p589_p6, %p583_p3 }
  0x13   :  { %593 = shalt.err (!%p590_p7)
}
  0x14   :  { %s667_s12 = smov 128   ;;  %s668_s13 = smov 8  }
  0x15   :  { %40 = dma.hbm_to_vmem [thread:$0]  %s785_s1, 4096, %s35_s27, [#allocation7], %s667_s12, %s667_s12, %s668_s13  }
  0x16   :  { %s669_s16 = smov [#allocation3]   ;;  %s594_s20 = scalar_lea.hbm %s784_s0, 512 }
  0x17   :  { %s22_s17 = sshll.u32 %s669_s16, 4  ;;  %p595_p8 = scmp.ne.s32.totalorder %s784_s0, %s594_s20  ;;  %s23_s17 = int_to_ptr.vmem [resolvable:$true] %s22_s17 }
  0x18   :  { %p598_p9 = scmp.lt.u32.totalorder %s594_s20, %s784_s0 }
  0x1a   :  { %p600_p10 = pnand %p598_p9, %p595_p8 }
  0x1c   :  { %603 = shalt.err (!%p600_p10)
}
  0x1d   :  { %s604_s25 = scalar_lea.vmem %s23_s17, 512  ;;  %p609_p12 = scmp.lt.s32.totalorder %s23_s17, %s23_s17 }
  0x1e   :  { %p605_p11 = scmp.ne.s32.totalorder %s23_s17, %s604_s25  ;;  %p610_p13 = scmp.lt.s32.totalorder %s604_s25, %s604_s25 }
  0x20   :  { %p611_p0 = por %p610_p13, %p609_p12 }
  0x22   :  { %p612_p1 = pnand %p611_p0, %p605_p11 }
  0x24   :  { %615 = shalt.err (!%p612_p1)
}
  0x25   :  { %s670_s1 = smov 256   ;;  %s671_s26 = smov 16  }
  0x26   :  { %28 = dma.hbm_to_vmem [thread:$0]  %s784_s0, 512, %s23_s17, [#allocation4], %s670_s1, %s670_s1, %s671_s26  }
  0x27   :  { %s672_s29 = smov [#allocation8]   ;;  %s616_s10 = scalar_lea.hbm %s787_s3, 2048 }
  0x28   :  { %s48_s30 = sshll.u32 %s672_s29, 4  ;;  %p617_p2 = scmp.ne.s32.totalorder %s787_s3, %s616_s10  ;;  %s49_s30 = int_to_ptr.vmem [resolvable:$true] %s48_s30 }
  0x29   :  { %p620_p3 = scmp.lt.u32.totalorder %s616_s10, %s787_s3 }
  0x2b   :  { %p622_p4 = pnand %p620_p3, %p617_p2 }
  0x2d   :  { %625 = shalt.err (!%p622_p4)
}
  0x2e   :  { %s626_s16 = scalar_lea.vmem %s49_s30, 2048  ;;  %p631_p6 = scmp.lt.s32.totalorder %s49_s30, %s49_s30 }
  0x2f   :  { %p627_p5 = scmp.ne.s32.totalorder %s49_s30, %s626_s16  ;;  %p632_p7 = scmp.lt.s32.totalorder %s626_s16, %s626_s16 }
  0x31   :  { %p633_p8 = por %p632_p7, %p631_p6 }
  0x33   :  { %p634_p9 = pnand %p633_p8, %p627_p5 }
  0x35   :  { %637 = shalt.err (!%p634_p9)
}
  0x36   :  { %54 = dma.hbm_to_vmem [thread:$0]  %s787_s3, 2048, %s49_s30, [#allocation7], %s667_s12, %s667_s12, %s668_s13  }
  0x37   :  { %660 = dma.done.wait [#allocation4], 512  }
  0x38   :  { %661 = vsyncadd [#allocation4], 4294966784 }
  0x39   :  { %662 = dma.done.wait [#allocation7], 6144  }
  0x3a   :  { %663 = vsyncadd [#allocation7], 4294961152  ;;  %v90_v1 = vld [vmem:[#allocation6 + $0x80] sm:$0xff]  ;;  %v91_v2 = vld [vmem:[#allocation6 + $0x88] sm:$0xff]  ;;  %vm674_vm0 = vmmov 0   ;;  %s677_s20 = smov [#allocation9]  }
  0x3b   :  { %v74_v3 = vld [vmem:[#allocation6] sm:$0xff]  ;;  %v492_v4 = vpack.c.bf16 %v91_v2, %v90_v1  ;;  %v75_v5 = vld [vmem:[#allocation6 + $0x8] sm:$0xff]  ;;  %v92_v6 = vld [vmem:[#allocation6 + $0x90] sm:$0xff]  ;;  %vm371_vm1 = vcmask 122880  }
  0x3c   :  { %v93_v7 = vld [vmem:[#allocation6 + $0x98] sm:$0xff]  ;;  %v494_v8 = vpack.c.bf16 %v75_v5, %v74_v3  ;;  %v76_v10 = vld [vmem:[#allocation6 + $0x10] sm:$0xff]  ;;  %v94_v12 = vld [vmem:[#allocation6 + $0xa0] sm:$0xff] }
  0x3d   :  { %v496_v9 = vpack.c.bf16 %v93_v7, %v92_v6  ;;  %v77_v11 = vld [vmem:[#allocation6 + $0x18] sm:$0xff]  ;;  %493 = vmatprep.subr.bf16.mxu0 %v492_v4  ;;  %v95_v13 = vld [vmem:[#allocation6 + $0xa8] sm:$0xff]  ;;  %v78_v16 = vld [vmem:[#allocation6 + $0x20] sm:$0xff] }
  0x3e   :  { %495 = vmatpush3.bf16.msra.mxu0 %v494_v8  ;;  %v498_v14 = vpack.c.bf16 %v77_v11, %v76_v10  ;;  %v500_v15 = vpack.c.bf16 %v95_v13, %v94_v12  ;;  %v79_v17 = vld [vmem:[#allocation6 + $0x28] sm:$0xff]  ;;  %v96_v18 = vld [vmem:[#allocation6 + $0xb0] sm:$0xff]  ;;  %v97_v19 = vld [vmem:[#allocation6 + $0xb8] sm:$0xff] }
  0x3f   :  { %497 = vmatprep.subr.bf16.mxu0 %v496_v9  ;;  %v502_v20 = vpack.c.bf16 %v79_v17, %v78_v16  ;;  %v504_v21 = vpack.c.bf16 %v97_v19, %v96_v18  ;;  %v80_v22 = vld [vmem:[#allocation6 + $0x30] sm:$0xff]  ;;  %v81_v23 = vld [vmem:[#allocation6 + $0x38] sm:$0xff]  ;;  %v98_v24 = vld [vmem:[#allocation6 + $0xc0] sm:$0xff] }
  0x40   :  { %v99_v25 = vld [vmem:[#allocation6 + $0xc8] sm:$0xff]  ;;  %v82_v27 = vld [vmem:[#allocation6 + $0x40] sm:$0xff]  ;;  %v506_v28 = vpack.c.bf16 %v81_v23, %v80_v22  ;;  %v192_v31 = vld [vmem:[#allocation8 + $0x10] sm:$0xff] }
  0x41   :  { %v71_v26 = vld [vmem:[#allocation3 + $0x8] sm:$0xff]  ;;  %v190_v29 = vld [vmem:[#allocation8] sm:$0xff]  ;;  %v508_v32 = vpack.c.bf16 %v99_v25, %v98_v24  ;;  %v100_v34 = vld [vmem:[#allocation6 + $0xd0] sm:$0xff]  ;;  %v673_v24 = vmov 0.0|0.0   ;;  %v675_v25 = vmov 0.0  }
  0x42   :  { %499 = vmatpush3.bf16.msra.mxu0 %v498_v14  ;;  %177 = vmatprep.mubr.f32.mxu0 %v71_v26  ;;  %v191_v30 = vld [vmem:[#allocation8 + $0x8] sm:$0xff]  ;;  %v193_v36 = vld [vmem:[#allocation8 + $0x18] sm:$0xff]  ;;  %v194_v39 = vld [vmem:[#allocation8 + $0x20] sm:$0xff] }
  0x43   :  { %501 = vmatprep.subr.bf16.mxu0 %v500_v15  ;;  %v83_v33 = vld [vmem:[#allocation6 + $0x48] sm:$0xff]  ;;  %v524_v35 = vpack.c.bf16 %v191_v30, %v190_v29  ;;  %v101_v37 = vld [vmem:[#allocation6 + $0xd8] sm:$0xff]  ;;  %v528_v38 = vpack.c.bf16 %v193_v36, %v192_v31  ;;  %v84_v43 = vld [vmem:[#allocation6 + $0x50] sm:$0xff] }
  0x44   :  { %v195_v40 = vld [vmem:[#allocation8 + $0x28] sm:$0xff]  ;;  %v510_v41 = vpack.c.bf16 %v83_v33, %v82_v27  ;;  %v512_v42 = vpack.c.bf16 %v101_v37, %v100_v34  ;;  %v85_v44 = vld [vmem:[#allocation6 + $0x58] sm:$0xff]  ;;  %v102_v45 = vld [vmem:[#allocation6 + $0xe0] sm:$0xff]  ;;  %v676_v27 = vmov 0   ;;  %v297_v37 = vlaneseq }
  0x45   :  { %525 = vmatprep.subr.bf16.mxu1 %v524_v35  ;;  %v532_v46 = vpack.c.bf16 %v195_v40, %v194_v39  ;;  %v103_v47 = vld [vmem:[#allocation6 + $0xe8] sm:$0xff]  ;;  %v196_v48 = vld [vmem:[#allocation8 + $0x30] sm:$0xff]  ;;  %v197_v49 = vld [vmem:[#allocation8 + $0x38] sm:$0xff]  ;;  %v514_v50 = vpack.c.bf16 %v85_v44, %v84_v43  ;;  %571 = vset.pattern.permute.xlu0 %v676_v27 }
  0x46   :  { %503 = vmatpush3.bf16.msra.mxu0 %v502_v20  ;;  %527 = vmatpush3.bf16.msra.mxu1 %v524_v35  ;;  %v516_v51 = vpack.c.bf16 %v103_v47, %v102_v45  ;;  %v86_v52 = vld [vmem:[#allocation6 + $0x60] sm:$0xff]  ;;  %v87_v53 = vld [vmem:[#allocation6 + $0x68] sm:$0xff]  ;;  %v104_v54 = vld [vmem:[#allocation6 + $0xf0] sm:$0xff]  ;;  %v536_v55 = vpack.c.bf16 %v197_v49, %v196_v48 }
  0x47   :  { %505 = vmatprep.subr.bf16.mxu0 %v504_v21  ;;  %529 = vmatprep.subr.bf16.mxu1 %v528_v38  ;;  %v105_v56 = vld [vmem:[#allocation6 + $0xf8] sm:$0xff]  ;;  %v198_v57 = vld [vmem:[#allocation8 + $0x40] sm:$0xff]  ;;  %v199_v58 = vld [vmem:[#allocation8 + $0x48] sm:$0xff]  ;;  %v518_v59 = vpack.c.bf16 %v87_v53, %v86_v52 }
  0x48   :  { %v520_v60 = vpack.c.bf16 %v105_v56, %v104_v54  ;;  %v88_v61 = vld [vmem:[#allocation6 + $0x70] sm:$0xff]  ;;  %v89_v62 = vld [vmem:[#allocation6 + $0x78] sm:$0xff]  ;;  %v540_v63 = vpack.c.bf16 %v199_v58, %v198_v57  ;;  %v70_v1 = vld [vmem:[#allocation3] sm:$0xff] }
  0x49   :  { %v522_v0 = vpack.c.bf16 %v89_v62, %v88_v61  ;;  %v73_v2 = vld [vmem:[#allocation3 + $0x18] sm:$0xff]  ;;  %v72_v3 = vld [vmem:[#allocation3 + $0x10] sm:$0xff]  ;;  %v202_v7 = vld [vmem:[#allocation8 + $0x60] sm:$0xff] }
  0x4a   :  { %507 = vmatpush3.bf16.msra.mxu0 %v506_v28  ;;  %531 = vmatpush3.bf16.msra.mxu1 %v528_v38  ;;  %v200_v4 = vld [vmem:[#allocation8 + $0x50] sm:$0xff]  ;;  %v201_v5 = vld [vmem:[#allocation8 + $0x58] sm:$0xff]  ;;  %v203_v8 = vld [vmem:[#allocation8 + $0x68] sm:$0xff]  ;;  %v298_v38 = vshrl.u32 %v297_v37, 7 }
  0x4b   :  { %509 = vmatprep.subr.bf16.mxu0 %v508_v32  ;;  %533 = vmatprep.subr.bf16.mxu1 %v532_v46  ;;  %v544_v6 = vpack.c.bf16 %v201_v5, %v200_v4  ;;  %v548_v9 = vpack.c.bf16 %v203_v8, %v202_v7  ;;  %v204_v10 = vld [vmem:[#allocation8 + $0x70] sm:$0xff]  ;;  %v205_v11 = vld [vmem:[#allocation8 + $0x78] sm:$0xff] }
  0x4c   :  { %v552_v12 = vpack.c.bf16 %v205_v11, %v204_v10  ;;  %v389_v15 = vld [vmem:[%s786_s2] ss:$0 sm:$0xff]  ;;  %v299_v39 = vsub.s32 0, %v298_v38 }
  0x4d   :  { %v291_v26 = vld [vmem:[#allocation2] sm:$0x1] }
  0x4e   :  { %511 = vmatpush3.bf16.msra.mxu0 %v510_v41  ;;  %535 = vmatpush3.bf16.msra.mxu1 %v532_v46  ;;  %v390_v28 = vld [vmem:[%s788_s4] ss:$0 sm:$0xff]  ;;  %s379_s4 = sshll.u32 %s677_s20, 4  ;;  %s380_s4 = int_to_ptr.vmem [resolvable:$true] %s379_s4 }
  0x4f   :  { %513 = vmatprep.subr.bf16.mxu0 %v512_v42  ;;  %537 = vmatprep.subr.bf16.mxu1 %v536_v55  ;;  %v290_v36 = vld [vmem:[%s789_s5] sm:$0x1]  ;;  %s638_s21 = scalar_lea.vmem %s380_s4, 16  ;;  %s642_s22 = scalar_lea.vmem %s380_s4, 32 }
  0x50   :  { %294 = vperm.xlu0 %571, %v291_v26   ;;  %p639_p10 = scmp.ne.s32.totalorder %s380_s4, %s638_s21  ;;  %p643_p11 = scmp.lt.s32.totalorder %s380_s4, %s380_s4 }
  0x51   :  { %p644_p12 = scmp.lt.s32.totalorder %s642_s22, %s638_s21 }
  0x52   :  { %515 = vmatpush3.bf16.msra.mxu0 %v514_v50  ;;  %539 = vmatpush3.bf16.msra.mxu1 %v536_v55 }
  0x53   :  { %517 = vmatprep.subr.bf16.mxu0 %v516_v51  ;;  %541 = vmatprep.subr.bf16.mxu1 %v540_v63  ;;  %p645_p13 = por %p644_p12, %p643_p11 }
  0x55   :  { %p646_p0 = pnand %p645_p13, %p639_p10 }
  0x56   :  { %519 = vmatpush3.bf16.msra.mxu0 %v518_v59  ;;  %543 = vmatpush3.bf16.msra.mxu1 %v540_v63 }
  0x57   :  { %521 = vmatprep.subr.bf16.mxu0 %v520_v60  ;;  %545 = vmatprep.subr.bf16.mxu1 %v544_v6 }
  0x5a   :  { %523 = vmatpush3.bf16.msra.mxu0 %v522_v0  ;;  %547 = vmatpush3.bf16.msra.mxu1 %v544_v6 }
  0x5b   :  { %549 = vmatprep.subr.bf16.mxu1 %v548_v9  ;;  %556 = vmatprep.subr.bf16.mxu0 %v673_v24 }
  0x5d   :  { %178 = vmatmul.mubr.f32.vlgmr.msra.gmra.mrb[0].mxu0 %v70_v1 }
  0x5e   :  { %182 = vmatprep.mubr.f32.mxu0 %v73_v2  ;;  %551 = vmatpush3.bf16.msra.mxu1 %v548_v9 }
  0x5f   :  { %553 = vmatprep.subr.bf16.mxu1 %v552_v12 }
  0x61   :  { %183 = vmatmul.mubr.f32.gmra.mrb[2].mxu0 %v72_v3 }
  0x62   :  { %555 = vmatpush3.bf16.msra.mxu1 %v552_v12  ;;  %489 = vmatprep.mubr.msk.f32.mxu0 %vm674_vm0, %v675_v25 }
  0xcf   :  { %v295_v40 = vpop.permute.xlu0 %294 }
  0xd0   :  { %v300_v41 = vrot.slane %v295_v40, %v299_v39 }
 0x130   :  { %v423_v13 = vpop.f32.mrb[0].mxu0 }
 0x131   :  { %v424_v14 = vpop.f32.mrb[1].mxu0 }
 0x132   :  { %v425_v16 = vadd.f32 %v424_v14, %v423_v13 }
 0x134   :  { %v426_v17 = vpop.f32.mrb[2].mxu0  ;;  %v180_v18 = vadd.f32 %v425_v16, %v389_v15 }
 0x135   :  { %v427_v19 = vpop.f32.mrb[3].mxu0 }
 0x136   :  { %v428_v20 = vadd.f32 %v427_v19, %v426_v17  ;;  %v188_v21 = vmax.f32 %v180_v18, 0.0 }
 0x138   :  { %v185_v22 = vadd.f32 %v428_v20, %v389_v15  ;;  %482 = vmatprep.mubr.f32.mxu1 %v188_v21 }
 0x13a   :  { %v189_v23 = vmax.f32 %v185_v22, 0.0 }
 0x13c   :  { %483 = vmatmul.mubr.f32.vlgmr.msra.gmra.mrb[0].mxu1 %v189_v23 }
 0x20f   :  { %v484_v29 = vpop.f32.mrb[0].mxu1 }
 0x210   :  { %v285_v30 = vadd.f32 %v484_v29, %v390_v28  ;;  %v279_v31 = vpop.f32.mrb[1].mxu1 }
 0x211   :  { %v280_v32 = vadd.f32 %v390_v28, %v279_v31 }
 0x212   :  { %v289_v33 = vmax.f32 %v285_v30, 0.0 }
 0x213   :  { %v288_v34 = vmax.f32 %v280_v32, 0.0 }
 0x215   :  { %v557_v35 = vpack.c.bf16 %v289_v33, %v288_v34 }
 0x217   :  { %558 = vmatpush3.bf16.xpose.msra.mxu0 %v557_v35 }
 0x21e   :  { %490 = vmatmul.mubr.f32.vlgmr.msra.gmra.mrb[4].mxu0 %v290_v36 }
 0x2f1   :  { %v367_v42 = vpop.f32.mrb[4].mxu0 }
 0x2f2   :  { %v368_v43 = vadd.f32 %v367_v42, %v300_v41  ;;  %v491_v44 = vpop.f32.mrb[5].mxu0 }
 0x2f4   :  { %372 = vst.msk [vmem:[#allocation9] sm:$0x1] %vm371_vm1, %v368_v43 }
 0x2f5   :  { %649 = shalt.err (!%p646_p0)
}
 0x2f6   :  { %s650_s24 = scalar_lea.hbm %s791_s7, 16 }
 0x2f7   :  { %p651_p1 = scmp.ne.s32.totalorder %s791_s7, %s650_s24  ;;  %p654_p2 = scmp.lt.u32.totalorder %s650_s24, %s791_s7 }
 0x2f9   :  { %p656_p3 = pnand %p654_p2, %p651_p1 }
 0x2fb   :  { %659 = shalt.err (!%p656_p3)
}
 0x2fc   :  { %382 = dma.vmem_to_hbm [thread:$0]  %s380_s4, 16, %s791_s7, [#allocation5]  }
 0x2fd   :  { %664 = dma.done.wait [#allocation5], 16  }
 0x2fe   :  { %665 = vsyncadd [#allocation5], 4294967280 }
 0x2ff   :  { %386 = vsyncpa [#allocation4], 1 }
 0x300   :  { %387 = vsyncpa [#allocation7], 1 }
 0x301   :  { %388 = vsyncpa [#allocation5], 1 }

</bundles_post_ra>
